<compile_context>
chip_gen: v7x
topology: tpu7x:2x2x1
jax: 0.10.0
libtpu: 0.0.40
codegen_flags: <defaults>
</compile_context>

<pallas_src>
import jax
import jax.numpy as jnp
from jax.experimental import pallas as pl
from jax.experimental.pallas import tpu as pltpu


def _round_up(x, m):
    return ((x + m - 1) // m) * m


def _chip_defaults():
    """Per-generation (tn_target, tile VMEM budget, vmem_limit_bytes)."""
    kind = ""
    try:
        kind = jax.devices()[0].device_kind.lower()
    except Exception:
        pass
    if "v7" in kind:
        # 64 MiB physical VMEM per TC; tn=512 already clears the MXU roofline.
        return 512, 24 << 20, 48 << 20
    if "v6" in kind:
        # 128 MiB physical; ~680 flops/byte needed -> prefer wide N tiles.
        return 1024, 80 << 20, 100 << 20
    if "v5" in kind:
        # 128 MiB physical but ~240 flops/byte roofline: small tiles are fine.
        return 384, 80 << 20, 100 << 20
    return 512, 24 << 20, 48 << 20  # conservative fallback


# ---------------------------------------------------------------------------
# Kernels
# ---------------------------------------------------------------------------
def _multi_seq_kernel_fused(x_ref, w_ref, b_ref, o_ref):
    """Single-K-tile path: whole contraction in one MXU call, no scratch."""
    acc = jnp.dot(x_ref[...], w_ref[0], preferred_element_type=jnp.float32)
    acc = acc + b_ref[0].astype(jnp.float32)
    o_ref[...] = jnp.maximum(acc, 0.0).astype(o_ref.dtype)


def _multi_seq_kernel_ktiled(x_ref, w_ref, b_ref, o_ref, acc_ref):
    """K-tiled path: f32 VMEM accumulator; bias + ReLU + store on last k."""
    k = pl.program_id(3)

    @pl.when(k == 0)
    def _init():
        acc_ref[...] = jnp.zeros_like(acc_ref)

    acc_ref[...] += jnp.dot(x_ref[...], w_ref[0],
                            preferred_element_type=jnp.float32)

    @pl.when(k == pl.num_programs(3) - 1)
    def _finish():
        acc = acc_ref[...] + b_ref[0].astype(jnp.float32)
        o_ref[...] = jnp.maximum(acc, 0.0).astype(o_ref.dtype)


# ---------------------------------------------------------------------------
# Wrapper
# ---------------------------------------------------------------------------
def multi_sequential(x, W, b, *, compute_dtype=None, out_dtype=None,
                     tm_target=256, tn_target=None, tk_target=None,
                     vmem_budget_bytes=None):
    """x: [B, D], W: [S, D, D], b: [S, 1, D] or [S, D] -> [B, D].

    Equivalent to torch MultiSequential.forward with each Sequential being
    Linear(D, D) + ReLU. Ragged batches route the remainder to the last
    sequential; B < S routes everything to the last sequential (torch
    slicing semantics).
    """
    B, D = x.shape
    S, Dw, Dn = W.shape
    assert Dw == D and Dn == D, "W must be [S, D, D]"
    b2 = jnp.reshape(b, (S, D))

    # torch sub_range: interval = B // S. If B < S, the leading chunks are
    # empty so only the last sequential produces output.
    if S > 1 and B // S == 0:
        return multi_sequential(
            x, W[-1:], b2[-1:], compute_dtype=compute_dtype,
            out_dtype=out_dtype, tm_target=tm_target, tn_target=tn_target,
            tk_target=tk_target, vmem_budget_bytes=vmem_budget_bytes)

    compute_dtype = compute_dtype or x.dtype     # bf16 is opt-in (torch parity)
    out_dtype = out_dtype or x.dtype
    in_bytes = jnp.dtype(compute_dtype).itemsize
    ob = jnp.dtype(out_dtype).itemsize

    chip_tn, tile_budget, vmem_limit = _chip_defaults()
    if tn_target is None:
        tn_target = chip_tn
    if vmem_budget_bytes is not None:
        tile_budget = int(vmem_budget_bytes * 0.85)
        vmem_limit = int(vmem_budget_bytes)

    interval = B // S
    sizes = [interval] * (S - 1) + [B - interval * (S - 1)]
    chunk_max = max(sizes)

    # --- tile selection ------------------------------------------------------
    Dp = _round_up(D, 128)                        # lane-dense feature dim
    tn = max(128, (min(Dp, int(tn_target)) // 128) * 128)
    while Dp % tn:
        tn -= 128
    if chunk_max <= tm_target:
        tm = _round_up(chunk_max, 8)
        chunk_pad = tm
    else:
        tm = _round_up(tm_target, 8)
        chunk_pad = _round_up(chunk_max, tm)
    tk = Dp if tk_target is None else min(Dp, _round_up(int(tk_target), 128))
    while Dp % tk:
        tk -= 128

    def _footprint(tk_, tn_):
        # double-buffered x & W tiles + f32 accumulator + double-buffered out.
        return (2 * (tm * tk_ + tk_ * tn_) * in_bytes
                + tm * tn_ * 4 + 2 * tm * tn_ * ob + 2 * tn_ * 4)

    while tk > 128 and _footprint(tk, tn) > tile_budget:
        tk -= 128
        while Dp % tk:
            tk -= 128
    while tn > 128 and _footprint(tk, tn) > tile_budget:
        tn -= 128
        while Dp % tn:
            tn -= 128

    num_m, num_n, num_k = chunk_pad // tm, Dp // tn, Dp // tk

    # --- streaming order -----------------------------------------------------
    # With a single K tile one operand stays VMEM-resident across the inner
    # grid axis; pick the order that minimizes redundant HBM reads.
    xp_bytes_tot = S * chunk_pad * Dp * in_bytes
    w_bytes_tot = S * Dp * Dp * in_bytes
    if num_k > 1:
        m_inner = True                            # both operands stream anyway
    else:
        m_inner = (num_n - 1) * xp_bytes_tot <= (num_m - 1) * w_bytes_tot

    # --- pack / pad inputs (cast first to halve repack traffic) --------------
    col_pad = Dp - D
    x_c = x.astype(compute_dtype)
    uniform_rows = all(sz == chunk_pad for sz in sizes)
    if uniform_rows:
        xp = jnp.pad(x_c, ((0, 0), (0, col_pad))) if col_pad else x_c
    else:
        parts, off = [], 0
        for sz in sizes:
            parts.append(jnp.pad(x_c[off:off + sz],
                                 ((0, chunk_pad - sz), (0, col_pad))))
            off += sz
        xp = jnp.concatenate(parts, axis=0)       # [S * chunk_pad, Dp]

    Wp = W.astype(compute_dtype)
    if col_pad:
        Wp = jnp.pad(Wp, ((0, 0), (0, col_pad), (0, col_pad)))
    bp = jnp.pad(b2, ((0, 0), (0, col_pad))) if col_pad else b2
    bp = bp.reshape(S, 1, Dp).astype(jnp.float32)

    # --- grid / specs ---------------------------------------------------------
    if m_inner:
        grid = (S, num_n, num_m, num_k)
        x_map = lambda s, n, m, k: (s * num_m + m, k)
        w_map = lambda s, n, m, k: (s, k, n)
        b_map = lambda s, n, m, k: (s, 0, n)
        o_map = lambda s, n, m, k: (s * num_m + m, n)
    else:
        grid = (S, num_m, num_n, num_k)
        x_map = lambda s, m, n, k: (s * num_m + m, k)
        w_map = lambda s, m, n, k: (s, k, n)
        b_map = lambda s, m, n, k: (s, 0, n)
        o_map = lambda s, m, n, k: (s * num_m + m, n)

    if num_k > 1:
        kernel = _multi_seq_kernel_ktiled
        scratch = [pltpu.VMEM((tm, tn), jnp.float32)]
    else:
        kernel = _multi_seq_kernel_fused
        scratch = []

    # --- cost estimate reflecting the actual re-read schedule ----------------
    x_reads = num_n if (num_k > 1 or m_inner) else 1
    w_reads = num_m if (num_k > 1 or not m_inner) else 1
    cost = pl.CostEstimate(
        flops=2 * S * chunk_pad * Dp * Dp,
        transcendentals=0,
        bytes_accessed=(x_reads * xp.size * in_bytes
                        + w_reads * Wp.size * in_bytes
                        + bp.size * 4
                        + S * chunk_pad * Dp * ob))

    out_p = pl.pallas_call(
        kernel,
        out_shape=jax.ShapeDtypeStruct((S * chunk_pad, Dp), out_dtype),
        grid_spec=pltpu.PrefetchScalarGridSpec(
            num_scalar_prefetch=0,
            grid=grid,
            in_specs=[
                pl.BlockSpec((tm, tk), x_map),
                pl.BlockSpec((1, tk, tn), w_map),
                pl.BlockSpec((1, 1, tn), b_map),
            ],
            out_specs=pl.BlockSpec((tm, tn), o_map),
            scratch_shapes=scratch,
        ),
        compiler_params=pltpu.CompilerParams(
            dimension_semantics=("parallel", "parallel", "parallel",
                                 "arbitrary"),
            vmem_limit_bytes=int(vmem_limit)),
        cost_estimate=cost,
    )(xp, Wp, bp)

    # --- undo packing (concat along dim 0 of the original chunks) ------------
    if uniform_rows:
        return out_p[:, :D] if col_pad else out_p
    outs = [out_p[i * chunk_pad:i * chunk_pad + sizes[i], :D]
            for i in range(S)]
    return jnp.concatenate(outs, axis=0)


def multi_sequential_ref(x, W, b):
    """Plain-JAX reference mirroring the torch semantics (incl. ragged/B<S)."""
    S = W.shape[0]
    B = x.shape[0]
    b2 = jnp.reshape(b, (S, -1))
    interval = B // S
    outs = []
    for i in range(S):
        xi = x[i * interval:] if i == S - 1 else x[i * interval:(i + 1) * interval]
        outs.append(jnp.maximum(xi @ W[i] + b2[i], 0.0))
    return jnp.concatenate(outs, axis=0)


if __name__ == "__main__":
    key = jax.random.PRNGKey(0)
    B, D, S = 16, 32, 2  # batch, hidden, num_sequentials

    kx, kw, kb = jax.random.split(key, 3)
    x = jax.random.normal(kx, (B, D), dtype=jnp.float32)
    W = jax.random.normal(kw, (S, D, D), dtype=jnp.float32) * 0.1
    b = jax.random.normal(kb, (S, 1, D), dtype=jnp.float32) * 0.1

    ref = multi_sequential_ref(x, W, b)

    # Default f32 path (torch parity; bf16 is opt-in).
    out = jax.block_until_ready(multi_sequential(x, W, b))
    assert out.shape == (B, D)
    assert jnp.allclose(out, ref, atol=1e-5, rtol=1e-5)

    # Opt-in bf16 MXU operands (f32 accumulation in-kernel).
    out_bf = jax.block_until_ready(
        multi_sequential(x, W, b, compute_dtype=jnp.bfloat16))
    assert out_bf.shape == (B, D)
    assert jnp.allclose(out_bf, ref, atol=3e-2, rtol=3e-2)

    # Ragged batch: remainder routed to the last sequential, as in torch.
    x_r = x[:13]
    out_r = jax.block_until_ready(multi_sequential(x_r, W, b))
    assert out_r.shape == (13, D)
    assert jnp.allclose(out_r, multi_sequential_ref(x_r, W, b),
                        atol=1e-5, rtol=1e-5)

    # B < S: leading chunks empty, only the last sequential runs.
    S3 = 3
    kw3, kb3 = jax.random.split(kw)
    W3 = jax.random.normal(kw3, (S3, D, D), dtype=jnp.float32) * 0.1
    b3 = jax.random.normal(kb3, (S3, 1, D), dtype=jnp.float32) * 0.1
    x_s = x[:1]
    out_s = jax.block_until_ready(multi_sequential(x_s, W3, b3))
    assert out_s.shape == (1, D)
    assert jnp.allclose(out_s, multi_sequential_ref(x_s, W3, b3),
                        atol=1e-5, rtol=1e-5)

    # Exercise the K-tiled accumulator path and the n-innermost ordering.
    D2 = 256
    x2 = jax.random.normal(kx, (B, D2), dtype=jnp.float32)
    W2 = jax.random.normal(kw, (S, D2, D2), dtype=jnp.float32) * 0.05
    b2v = jax.random.normal(kb, (S, 1, D2), dtype=jnp.float32) * 0.1
    ref2 = multi_sequential_ref(x2, W2, b2v)

    out_kt = jax.block_until_ready(          # K-tiled: num_k = 2, acc scratch
        multi_sequential(x2, W2, b2v, tk_target=128, tn_target=128))
    assert jnp.allclose(out_kt, ref2, atol=1e-4, rtol=1e-4)

    out_ni = jax.block_until_ready(          # single K tile, n innermost
        multi_sequential(x2, W2, b2v, tn_target=128))
    assert jnp.allclose(out_ni, ref2, atol=1e-4, rtol=1e-4)

    print("KERNEL_OK")
</pallas_src>

<mosaic_0001>
module attributes {stable_mosaic.version = 11 : i64} {
  func.func @_multi_seq_kernel_fused(%arg0: i32, %arg1: i32, %arg2: i32, %arg3: i32, %arg4: memref<8x128xf32, #tpu.memory_space<vmem>>, %arg5: memref<1x128x128xf32, #tpu.memory_space<vmem>>, %arg6: memref<1x1x128xf32, #tpu.memory_space<vmem>>, %arg7: memref<8x128xf32, #tpu.memory_space<vmem>>) attributes {dimension_semantics = [#tpu.dimension_semantics<parallel>, #tpu.dimension_semantics<parallel>, #tpu.dimension_semantics<parallel>, #tpu.dimension_semantics<arbitrary>], iteration_bounds = array<i64: 2, 1, 1, 1>, scalar_prefetch = 0 : i64, scratch_operands = 0 : i64, tpu.core_type = #tpu.core_type<tc>, window_params = [{transform_indices = @transform_0, window_bounds = array<i64: 8, 128>}, {transform_indices = @transform_1, window_bounds = array<i64: 1, 128, 128>}, {transform_indices = @transform_2, window_bounds = array<i64: 1, 1, 128>}, {transform_indices = @transform_3, window_bounds = array<i64: 8, 128>}]} {
    %c0 = arith.constant 0 : index
    %c0_0 = arith.constant 0 : index
    %0 = vector.load %arg4[%c0, %c0_0] : memref<8x128xf32, #tpu.memory_space<vmem>>, vector<8x128xf32>
    %c0_1 = arith.constant 0 : index
    %c0_2 = arith.constant 0 : index
    %c0_3 = arith.constant 0 : index
    %1 = vector.load %arg5[%c0_1, %c0_2, %c0_3] : memref<1x128x128xf32, #tpu.memory_space<vmem>>, vector<1x128x128xf32>
    %2 = vector.shape_cast %1 : vector<1x128x128xf32> to vector<128x128xf32>
    %cst = arith.constant dense<0.000000e+00> : vector<8x128xf32>
    %3 = tpu.matmul %0, %2, %cst {dimension_numbers = #tpu.dot_dimension_numbers<[1], [0], [0], [1], [0, 0, 1, 1], [], []>} : vector<8x128xf32>, vector<128x128xf32>, vector<8x128xf32> -> vector<8x128xf32>
    %c0_4 = arith.constant 0 : index
    %c0_5 = arith.constant 0 : index
    %c0_6 = arith.constant 0 : index
    %4 = vector.load %arg6[%c0_4, %c0_5, %c0_6] : memref<1x1x128xf32, #tpu.memory_space<vmem>>, vector<1x1x128xf32>
    %5 = vector.shape_cast %4 : vector<1x1x128xf32> to vector<1x128xf32>
    %6 = vector.broadcast %5 : vector<1x128xf32> to vector<8x128xf32>
    %7 = arith.addf %3, %6 : vector<8x128xf32>
    %cst_7 = arith.constant 0.000000e+00 : f32
    %8 = vector.broadcast %cst_7 : f32 to vector<8x128xf32>
    %9 = arith.maximumf %7, %8 : vector<8x128xf32>
    %c0_8 = arith.constant 0 : index
    %c0_9 = arith.constant 0 : index
    %10 = vector.load %arg7[%c0_8, %c0_9] : memref<8x128xf32, #tpu.memory_space<vmem>>, vector<8x128xf32>
    tpu.vector_store %arg7[%c0_8, %c0_9], %9 {strides = array<i32>} : memref<8x128xf32, #tpu.memory_space<vmem>>, vector<8x128xf32>,
    return
  }
  func.func @transform_0(%arg0: i32, %arg1: i32, %arg2: i32, %arg3: i32) -> (i32, i32) {
    %c1_i32 = arith.constant 1 : i32
    %0 = arith.muli %arg0, %c1_i32 : i32
    %1 = arith.addi %0, %arg2 : i32
    %c0_i32 = arith.constant 0 : i32
    return %1, %arg3 : i32, i32
  }
  func.func @transform_1(%arg0: i32, %arg1: i32, %arg2: i32, %arg3: i32) -> (i32, i32, i32) {
    %c0_i32 = arith.constant 0 : i32
    return %arg0, %arg3, %arg1 : i32, i32, i32
  }
  func.func @transform_2(%arg0: i32, %arg1: i32, %arg2: i32, %arg3: i32) -> (i32, i32, i32) {
    %c0_i32 = arith.constant 0 : i32
    %c0_i32_0 = arith.constant 0 : i32
    return %arg0, %c0_i32, %arg1 : i32, i32, i32
  }
  func.func @transform_3(%arg0: i32, %arg1: i32, %arg2: i32, %arg3: i32) -> (i32, i32) {
    %c1_i32 = arith.constant 1 : i32
    %0 = arith.muli %arg0, %c1_i32 : i32
    %1 = arith.addi %0, %arg2 : i32
    %c0_i32 = arith.constant 0 : i32
    return %1, %arg1 : i32, i32
  }
}

</mosaic_0001>

<bundles_post_ra>
// kernel: tpu_custom_call.1
= control target key start
LH: loop header
LB: loop body
LE: loop exit
PB: predicated region body
PF: predicated region fallthrough
CT: control target
= control target key end

     0   :  { %8 = vsyncpa [#allocation3], 0  ;;  %s1129_s0 = inlined_call_operand.hbm [shape: f32[16,128], index: 0, kind: input, shape index: {}]   ;;  %s1130_s1 = inlined_call_operand.hbm [shape: f32[2,128,128], index: 1, kind: input, shape index: {}]   ;;  %s1131_s2 = inlined_call_operand.vmem [shape: f32[2,1,128], index: 2, kind: input, shape index: {}]   ;;  %s1132_s3 = inlined_call_operand.hbm [shape: f32[16,128], index: 3, kind: output, shape index: {}]  }
   0x1   :  { %10 = vsyncpa [#allocation3 + $0x1], 0 }
   0x2   :  { %11 = vsyncpa [#allocation6], 0 }
   0x3   :  { %13 = vsyncpa [#allocation6 + $0x1], 0 }
   0x4   :  { %14 = vsyncpa [#allocation4], 0 }
   0x5   :  { %16 = vsyncpa [#allocation4 + $0x1], 0  ;;  %s876_s12 = smov 0   ;;  %s878_s13 = smov 0  }
   0x6   :  { %s880_s14 = smov 0   ;;  %s882_s15 = smov 0  }
   0x7   :  { %s884_s16 = smov 0   ;;  %s886_s17 = smov 0  }
   0x8 LB: > { %s533_s18 = sadd.s32 4294967295, %s846_s17   ;;  %s534_s19 = sadd.s32 4294967294, %s846_s17   ;;  %s846_s17 = sphi %s886_s17, %s22_s17   ;;  %s842_s16 = sphi %s884_s16, %s1151_s16   ;;  %s838_s15 = sphi %s882_s15, %s1150_s15   ;;  %s834_s14 = sphi %s880_s14, %s1149_s14   ;;  %s830_s13 = sphi %s878_s13, %s1148_s13   ;;  %s826_s12 = sphi %s876_s12, %s1147_s12  }
   0x9   : > { %s48_s20 = sadd.s32 1, %s842_s16  ;;  %s59_s21 = sadd.s32 1, %s834_s14 }
   0xa   : > { %p50_p0 = scmp.ge.s32.totalorder %s48_s20, 2  ;;  %p66_p1 = scmp.ne.s32.totalorder %s834_s14, %s830_s13 }
   0xb   : > { %p67_p2 = scmp.eq.s32.totalorder %s846_s17, 0  ;;  %p72_p3 = scmp.ne.s32.totalorder %s830_s13, %s826_s12 }
   0xc   : > { %s1153_s20 = smov (%p50_p0, %s48_s20), 0  ;;  %p73_p5 = scmp.eq.s32.totalorder %s533_s18, 0 }
   0xd   : > { %p917_p4 = por %p67_p2, %p66_p1  ;;  %s54_s23 = ssub.s32 %s842_s16, %s1153_s20 }
   0xe   : > { %p158_p6 = scmp.eq.s32.totalorder %s533_s18, 1  ;;  %p57_p7 = scmp.eq.s32.totalorder %s54_s23, 0 }
   0xf   : > { %p923_p8 = por %p73_p5, %p72_p3  ;;  %p164_p10 = scmp.eq.s32.totalorder %s534_s19, 1 }
  0x10   : > { %p927_p9 = por %p158_p6, %p66_p1  ;;  %p645_p13 = scmp.lt.s32.totalorder %s846_s17, 2 }
  0x11   : > { %s1136_s24 = scalar_select %p923_p8, 1, 0 }
  0x12   : > { %s1137_s25 = scalar_select %p927_p9, 1, 0 }
  0x13   : > { %s932_s26 = scalar_select %p57_p7, %s834_s14, %s59_s21  }
  0x14   : > { %p934_p11 = por %p164_p10, %p72_p3  ;;  %s941_s28 = sand.u32 1, %s834_s14  }
  0x15   : > { %s537_s29 = sshll.u32 %s941_s28, 3  ;;  %s538_s30 = sshll.u32 %s842_s16, 7 }
  0x16   : > { %s1138_s27 = scalar_select %p934_p11, 1, 0 }
  0x17   : > { %s948_s6 = scalar_lea.hbm %s1129_s0, %s538_s30  ;;  %s188_s7 = scalar_lea.vmem [#allocation2], %s537_s29 }
  0x18   : > { %s197_s8 = sshll.u32 %s188_s7, 4  ;;  %p954_p0 = pnand %p645_p13, %p917_p4  ;;  %s950_s8 = int_to_ptr.vmem [resolvable:$true] %s197_s8 }
  0x19   : > { %s185_s10 = scalar_lea.sflag [#allocation3], %s941_s28  ;;  %s700_s11 = scalar_lea.hbm %s948_s6, 128 }
  0x1a   : > { %p701_p3 = scmp.ne.s32.totalorder %s948_s6, %s700_s11  ;;  %p702_p5 = pneg %p954_p0 }
  0x1b   : > { %s705_s21 = scalar_lea.hbm %s1129_s0, 256  ;;  %p706_p4 = scmp.lt.u32.totalorder %s948_s6, %s1129_s0 }
  0x1c   : > { %p703_p6 = pnand %p702_p5, %p701_p3  ;;  %p707_p10 = scmp.lt.u32.totalorder %s705_s21, %s700_s11 }
  0x1d   : > { %p709_p12 = scmp.lt.u32.totalorder %s700_s11, %s948_s6 }
  0x1e   : > { %p704_p7 = pneg %p703_p6  ;;  %p708_p13 = por %p707_p10, %p706_p4 }
  0x20   : > { %p710_p1 = por %p709_p12, %p708_p13 }
  0x22   : > { %p711_p2 = pnand %p710_p1, %p704_p7 }
  0x24   : > { %714 = shalt.err (!%p711_p2)
}
  0x25   : > { %s715_s29 = scalar_lea.vmem %s950_s8, 128  ;;  %s848_s30 = smov [#allocation2]  }
  0x26   : > { %p716_p3 = scmp.ne.s32.totalorder %s950_s8, %s715_s29  ;;  %s720_s4 = sshll.u32 %s848_s30, 4  ;;  %s721_s4 = int_to_ptr.vmem [resolvable:$false] %s720_s4 }
  0x27   : > { %s722_s5 = scalar_lea.vmem %s721_s4, 256  ;;  %p723_p9 = scmp.lt.s32.totalorder %s950_s8, %s721_s4 }
  0x28   : > { %p718_p6 = pnand %p716_p3, %p702_p5  ;;  %p724_p4 = scmp.lt.s32.totalorder %s722_s5, %s715_s29 }
  0x2a   : > { %p719_p11 = pneg %p718_p6  ;;  %p725_p10 = por %p724_p4, %p723_p9 }
  0x2c   : > { %p726_p12 = pnand %p725_p10, %p719_p11 }
  0x2e   : > { %729 = shalt.err (!%p726_p12)
}
  0x2f   : > { %637 = dma.hbm_to_vmem [thread:$0]  (!%p954_p0), %s948_s6, 128, %s950_s8, %s185_s10  }
  0x30   : > { %p1140_p1 = scmp.lt.s32.totalorder %s846_s17, 3  ;;  %p1141_p2 = scmp.ge.s32.totalorder %s846_s17, 1 }
  0x31   : > { %s539_s11 = sshll.u32 %s941_s28, 7  ;;  %s551_s18 = sshll.u32 %s842_s16, 11 }
  0x32   : > { %p990_p7 = pnand %p1141_p2, %p1140_p1  ;;  %s999_s22 = scalar_lea.hbm %s1130_s1, %s551_s18 }
  0x33   : > { %s208_s23 = scalar_lea.vmem [#allocation5], %s539_s11  ;;  %s205_s6 = scalar_lea.sflag [#allocation6], %s941_s28 }
  0x34   : > { %s218_s29 = sshll.u32 %s208_s23, 4  ;;  %s730_s8 = scalar_lea.hbm %s999_s22, 2048  ;;  %s1001_s29 = int_to_ptr.vmem [resolvable:$true] %s218_s29 }
  0x35   : > { %p731_p9 = scmp.ne.s32.totalorder %s999_s22, %s730_s8  ;;  %s735_s4 = scalar_lea.hbm %s1130_s1, 4096 }
  0x36   : > { %p736_p3 = scmp.lt.u32.totalorder %s999_s22, %s1130_s1  ;;  %p737_p6 = scmp.lt.u32.totalorder %s735_s4, %s730_s8 }
  0x37   : > { %p733_p11 = pnand %p731_p9, %p702_p5  ;;  %p739_p10 = scmp.lt.u32.totalorder %s730_s8, %s999_s22 }
  0x38   : > { %p738_p4 = por %p737_p6, %p736_p3 }
  0x39   : > { %p734_p13 = pneg %p733_p11 }
  0x3a   : > { %p740_p12 = por %p739_p10, %p738_p4 }
  0x3c   : > { %p741_p1 = pnand %p740_p12, %p734_p13 }
  0x3e   : > { %744 = shalt.err (!%p741_p1)
}
  0x3f   : > { %s745_s11 = scalar_lea.vmem %s1001_s29, 2048  ;;  %s849_s19 = smov [#allocation5]  }
  0x40   : > { %p746_p2 = scmp.ne.s32.totalorder %s1001_s29, %s745_s11  ;;  %s750_s21 = sshll.u32 %s849_s19, 4  ;;  %s751_s21 = int_to_ptr.vmem [resolvable:$false] %s750_s21 }
  0x41   : > { %s752_s23 = scalar_lea.vmem %s751_s21, 4096  ;;  %p753_p8 = scmp.lt.s32.totalorder %s1001_s29, %s751_s21 }
  0x42   : > { %p748_p9 = pnand %p746_p2, %p702_p5  ;;  %p754_p3 = scmp.lt.s32.totalorder %s752_s23, %s745_s11 }
  0x44   : > { %p749_p11 = pneg %p748_p9  ;;  %p755_p6 = por %p754_p3, %p753_p8 }
  0x46   : > { %p756_p4 = pnand %p755_p6, %p749_p11 }
  0x48   : > { %759 = shalt.err (!%p756_p4)
}
  0x49   : > { %s850_s8 = smov 128   ;;  %s851_s10 = smov 8  }
  0x4a   : > { %640 = dma.hbm_to_vmem [thread:$0]  (!%p954_p0), %s999_s22, 2048, %s1001_s29, %s205_s6, %s850_s8, %s850_s8, %s851_s10  }
  0x4b   : > { %239 = sbr.rel (%p990_p7) target bundleno = 350 (0x15e), region = 32  ;;  %s1032_s30 = sand.u32 (!%p990_p7), 1, %s830_s13  }
  0x4c   : > { %s543_s4 = sshll.u32 (!%p990_p7), %s1032_s30, 3  ;;  %s242_s5 = scalar_lea.sflag (!%p990_p7), [#allocation3], %s1032_s30 }
  0x4d   : > { %s1038_s18 = scalar_lea.vmem (!%p990_p7), [#allocation2], %s543_s4  ;;  %p1143_p8 = scmp.ne.s32.totalorder (!%p990_p7), %s1136_s24, 0 }
  0x52   : > { %813 = dma.done.wait (%p1143_p8), %s242_s5, 128  }
  0x53   : > { %815 = vsyncadd (%p1143_p8), %s242_s5, 4294967168  ;;  %s544_s28 = sshll.u32 %s1032_s30, 7  ;;  %s251_s9 = scalar_lea.sflag [#allocation6], %s1032_s30 }
  0x54   : > { %s1046_s7 = scalar_lea.vmem [#allocation5], %s544_s28 }
  0x55   : > { %817 = dma.done.wait (%p1143_p8), %s251_s9, 2048  }
  0x56   : > { %819 = vsyncadd (%p1143_p8), %s251_s9, 4294965248  ;;  %v852_v0 = vmov 0.0|0.0   ;;  %vm853_vm0 = vmmov 0   ;;  %v854_v1 = vmov 0.0   ;;  %v298_v2 = vld [vmem:[%s1046_s7] sm:$0xff]  ;;  %v299_v3 = vld [vmem:[%s1046_s7 + $0x8] sm:$0xff] }
  0x57   : > { %604 = vmatprep.subr.bf16.mxu0 %v852_v0  ;;  %601 = vmatprep.mubr.msk.f32.mxu0 %vm853_vm0, %v854_v1  ;;  %v300_v4 = vld [vmem:[%s1046_s7 + $0x10] sm:$0xff]  ;;  %v605_v5 = vpack.c.bf16 %v299_v3, %v298_v2  ;;  %v301_v6 = vld [vmem:[%s1046_s7 + $0x18] sm:$0xff]  ;;  %v302_v8 = vld [vmem:[%s1046_s7 + $0x20] sm:$0xff]  ;;  %p290_p0 = scmp.lt.s32.totalorder %s838_s15, 1  ;;  %s548_s11 = sshll.u32 %s838_s15, 7 }
  0x58   : > { %v608_v7 = vpack.c.bf16 %v301_v6, %v300_v4  ;;  %v303_v9 = vld [vmem:[%s1046_s7 + $0x28] sm:$0xff]  ;;  %v304_v11 = vld [vmem:[%s1046_s7 + $0x30] sm:$0xff]  ;;  %v305_v12 = vld [vmem:[%s1046_s7 + $0x38] sm:$0xff]  ;;  %s287_s19 = scalar_lea.vmem [#allocation7], %s543_s4  ;;  %s1080_s10 = scalar_lea.hbm %s1132_s3, %s548_s11 }
  0x59   : > { %606 = vmatpush3.bf16.msra.mxu0 %v605_v5  ;;  %v611_v10 = vpack.c.bf16 %v303_v9, %v302_v8  ;;  %v614_v13 = vpack.c.bf16 %v305_v12, %v304_v11  ;;  %v306_v14 = vld [vmem:[%s1046_s7 + $0x40] sm:$0xff]  ;;  %v307_v15 = vld [vmem:[%s1046_s7 + $0x48] sm:$0xff]  ;;  %v308_v17 = vld [vmem:[%s1046_s7 + $0x50] sm:$0xff]  ;;  %s291_s24 = scalar_select %p290_p0, %s838_s15, 1 }
  0x5a   : > { %607 = vmatprep.subr.bf16.mxu0 %v852_v0  ;;  %v617_v16 = vpack.c.bf16 %v307_v15, %v306_v14  ;;  %v309_v18 = vld [vmem:[%s1046_s7 + $0x58] sm:$0xff]  ;;  %v310_v20 = vld [vmem:[%s1046_s7 + $0x60] sm:$0xff]  ;;  %v311_v21 = vld [vmem:[%s1046_s7 + $0x68] sm:$0xff]  ;;  %s409_s21 = sshll.u32 %s287_s19, 4  ;;  %s394_s5 = scalar_lea.sflag [#allocation4], %s1032_s30  ;;  %s1082_s21 = int_to_ptr.vmem [resolvable:$true] %s409_s21 }
  0x5b   : > { %v620_v19 = vpack.c.bf16 %v309_v18, %v308_v17  ;;  %v623_v22 = vpack.c.bf16 %v311_v21, %v310_v20  ;;  %v312_v23 = vld [vmem:[%s1046_s7 + $0x70] sm:$0xff]  ;;  %v313_v24 = vld [vmem:[%s1046_s7 + $0x78] sm:$0xff]  ;;  %s295_s6 = scalar_lea.vmem %s1131_s2, %s291_s24  ;;  %p1144_p7 = scmp.ne.s32.totalorder %s1137_s25, 0 }
  0x5c   : > { %v626_v25 = vpack.c.bf16 %v313_v24, %v312_v23  ;;  %v297_v26 = vld [vmem:[%s1038_s18] sm:$0xff]  ;;  %s760_s18 = scalar_lea.vmem %s1082_s21, 128  ;;  %s855_s15 = smov [#allocation7]  }
  0x5d   : > { %609 = vmatpush3.bf16.msra.mxu0 %v608_v7  ;;  %v546_v27 = vld [vmem:[%s295_s6] ss:$0 sm:$0xff]  ;;  %p761_p5 = scmp.ne.s32.totalorder %s1082_s21, %s760_s18  ;;  %s764_s4 = sshll.u32 %s855_s15, 4  ;;  %s765_s4 = int_to_ptr.vmem [resolvable:$false] %s764_s4 }
  0x5e   : > { %610 = vmatprep.subr.bf16.mxu0 %v852_v0  ;;  %s766_s28 = scalar_lea.vmem %s765_s4, 256  ;;  %p767_p12 = scmp.lt.s32.totalorder %s1082_s21, %s765_s4 }
  0x5f   : > { %p762_p13 = pnand %p761_p5, %p1144_p7  ;;  %p768_p1 = scmp.lt.s32.totalorder %s766_s28, %s760_s18 }
  0x61   : > { %612 = vmatpush3.bf16.msra.mxu0 %v611_v10  ;;  %p763_p10 = pneg %p762_p13  ;;  %p769_p2 = por %p768_p1, %p767_p12 }
  0x62   : > { %613 = vmatprep.subr.bf16.mxu0 %v852_v0 }
  0x63   : > { %p770_p9 = pnand %p769_p2, %p763_p10 }
  0x65   : > { %615 = vmatpush3.bf16.msra.mxu0 %v614_v13 }
  0x66   : > { %616 = vmatprep.subr.bf16.mxu0 %v852_v0 }
  0x69   : > { %618 = vmatpush3.bf16.msra.mxu0 %v617_v16 }
  0x6a   : > { %619 = vmatprep.subr.bf16.mxu0 %v852_v0 }
  0x6d   : > { %621 = vmatpush3.bf16.msra.mxu0 %v620_v19 }
  0x6e   : > { %622 = vmatprep.subr.bf16.mxu0 %v852_v0 }
  0x71   : > { %624 = vmatpush3.bf16.msra.mxu0 %v623_v22 }
  0x72   : > { %625 = vmatprep.subr.bf16.mxu0 %v852_v0 }
  0x75   : > { %627 = vmatpush3.bf16.msra.mxu0 %v626_v25 }
  0x78   : > { %602 = vmatmul.mubr.f32.vlgmr.msra.gmra.mrb[0].mxu0 %v297_v26 }
 0x14b   : > { %v387_v28 = vpop.f32.mrb[0].mxu0 }
 0x14c   : > { %v388_v29 = vadd.f32 %v546_v27, %v387_v28  ;;  %v603_v30 = vpop.f32.mrb[1].mxu0 }
 0x14e   : > { %v391_v31 = vmax.f32 %v388_v29, 0.0 }
 0x150   : > { %392 = vst [vmem:[%s287_s19] sm:$0xff] %v391_v31 }
 0x151   : > { %773 = shalt.err (!%p770_p9)
}
 0x152   : > { %s774_s30 = scalar_lea.hbm %s1080_s10, 128  ;;  %s778_s24 = scalar_lea.hbm %s1132_s3, 256 }
 0x153   : > { %p775_p11 = scmp.ne.s32.totalorder %s1080_s10, %s774_s30  ;;  %p779_p4 = scmp.lt.u32.totalorder %s1080_s10, %s1132_s3 }
 0x154   : > { %p780_p8 = scmp.lt.u32.totalorder %s778_s24, %s774_s30  ;;  %p782_p5 = scmp.lt.u32.totalorder %s774_s30, %s1080_s10 }
 0x155   : > { %p776_p3 = pnand %p775_p11, %p1144_p7 }
 0x156   : > { %p781_p0 = por %p780_p8, %p779_p4 }
 0x157   : > { %p777_p6 = pneg %p776_p3 }
 0x158   : > { %p783_p13 = por %p782_p5, %p781_p0 }
 0x15a   : > { %p784_p10 = pnand %p783_p13, %p777_p6 }
 0x15c   : > { %787 = shalt.err (!%p784_p10)
}
 0x15d   : > { %632 = dma.vmem_to_hbm [thread:$0]  (%p1144_p7), %s1082_s21, 128, %s1080_s10, %s394_s5  }
 0x15e PF: > { %s421_s6 = sand.u32 1, %s826_s12   ;;  %p1145_p12 = scmp.ne.s32.totalorder %s1138_s27, 0 }
 0x15f   : > { %p1146_p1 = scmp.ge.s32.totalorder %s846_s17, 2  ;;  %s422_s11 = scalar_lea.sflag [#allocation4], %s421_s6 }
 0x161   : > { %p642_p2 = pnand %p1146_p1, %p1145_p12 }
 0x163   : > { %821 = dma.done.wait (!%p642_p2), %s422_s11, 128  }
 0x164   : > { %823 = vsyncadd (!%p642_p2), %s422_s11, 4294967168  ;;  %s22_s17 = sadd.s32 1, %s846_s17   ;;  %s1147_s12 = smov %s830_s13 }
 0x165   : > { %p19_p9 = scmp.ge.s32.totalorder %s22_s17, 4   ;;  %s1148_s13 = smov %s834_s14 }
 0x166   : > { %s1149_s14 = smov %s932_s26  ;;  %s1150_s15 = smov %s842_s16 }
 0x167   : > { %s1151_s16 = smov %s1153_s20  ;;  %21 = sbr.rel (!%p19_p9) target bundleno = 8 (0x8), region = 93 }
 0x16e   :  { %427 = vsyncpa [#allocation3], 1 }
 0x16f   :  { %429 = vsyncpa [#allocation3 + $0x1], 1 }
 0x170   :  { %430 = vsyncpa [#allocation6], 1 }
 0x171   :  { %432 = vsyncpa [#allocation6 + $0x1], 1 }
 0x172   :  { %433 = vsyncpa [#allocation4], 1 }
 0x173   :  { %435 = vsyncpa [#allocation4 + $0x1], 1 }

</bundles_post_ra>
